<compile_context>
chip_gen: v5e
topology: v5e:2x2
jax: 0.10.0
libtpu: 0.0.40
codegen_flags: <defaults>
</compile_context>

<pallas_src>
import jax
import jax.numpy as jnp
from jax.experimental import pallas as pl
from jax.experimental.pallas import tpu as pltpu


def _drop_path_kernel(scale_ref, x_ref, o_ref):
    """o = x * scale  (scale is 0 or 1/keep_prob per sample).

    scale_ref : VMEM (TB, 1)  in x.dtype  (per-sample scale, broadcast over F)
    x_ref     : VMEM (TB, TF)
    o_ref     : VMEM (TB, TF)
    """
    # Native-dtype multiply (no f32 round-trip); VALU has huge slack in a
    # mem-bound kernel, broadcast costs nothing.
    o_ref[...] = x_ref[...] * scale_ref[...]


def _choose_tiles(B, F, itemsize):
    """Pick a (TB, TF) block of ~2 MiB, lane-dense whenever F is 128-aligned.

    Keeps double-buffered in+out tiles well under v7x's 32 MiB default scoped
    VMEM while staying in the large-tile DMA regime (>= 85% of HBM roofline).
    """
    target_elems = max(1, (2 * 1024 * 1024) // itemsize)  # ~2 MiB per buffer
    TB = B if B <= 8 else 8  # multiple of 8, or full B (BlockSpec (8,128) rule)
    if F % 128 == 0:
        # Lane-dense feature tile: large multiple of 128.
        TF = min(F, max(128, (target_elems // TB) // 128 * 128))
    else:
        # Feature dim not 128-aligned: take the full row (full-extent block is
        # allowed), and grow the batch tile toward the target size instead.
        TF = F
        if B > 8:
            TB = max(8, (min(B, target_elems // max(1, F)) // 8) * 8)
    return TB, TF


def drop_path(x, drop_prob, training, key):
    """JAX/Pallas equivalent of the PyTorch drop_path forward."""
    if drop_prob is None or drop_prob == 0.0 or not training:
        return x

    keep_prob = 1.0 - float(drop_prob)
    B = x.shape[0]

    # Per-sample binary keep mask (matches torch: floor(keep_prob + U[0,1))).
    rand = keep_prob + jax.random.uniform(key, (B,), dtype=jnp.float32)
    mask = jnp.floor(rand)  # 0.0 or 1.0 per sample
    # Per-sample scale in the input's native dtype: 0 or 1/keep_prob.
    scale = (mask * (1.0 / keep_prob)).astype(x.dtype).reshape(B, 1)

    orig_shape = x.shape
    F = max(1, x.size // B)          # flatten all trailing dims -> lane axis
    x2 = x.reshape(B, F)

    TB, TF = _choose_tiles(B, F, x2.dtype.itemsize)
    grid = (pl.cdiv(B, TB), pl.cdiv(F, TF))

    # TODO(synk): for large drop_prob on a hot path, skip the input DMA for
    # dropped samples (needs memory_space=pl.ANY + manual copy gated by
    # pl.when); not expressible with BlockSpec auto-pipelining.
    out = pl.pallas_call(
        _drop_path_kernel,
        out_shape=jax.ShapeDtypeStruct((B, F), x.dtype),
        grid_spec=pltpu.PrefetchScalarGridSpec(
            num_scalar_prefetch=0,
            grid=grid,
            in_specs=[
                pl.BlockSpec((TB, 1), lambda ib, jf: (ib, 0)),    # scale
                pl.BlockSpec((TB, TF), lambda ib, jf: (ib, jf)),  # x
            ],
            out_specs=pl.BlockSpec((TB, TF), lambda ib, jf: (ib, jf)),
        ),
        compiler_params=pltpu.CompilerParams(
            dimension_semantics=("parallel", "parallel"),
        ),
        cost_estimate=pl.CostEstimate(
            flops=B * F,
            transcendentals=0,
            bytes_accessed=2 * x2.size * x2.dtype.itemsize
            + scale.size * scale.dtype.itemsize,
        ),
    )(scale, x2)

    return out.reshape(orig_shape)


class DropPath:
    """Drop paths (Stochastic Depth) per sample — Pallas TPU version."""

    def __init__(self, drop_prob=None):
        self.drop_prob = drop_prob
        self.training = True

    def __call__(self, x, key):
        return drop_path(x, self.drop_prob, self.training, key)


if __name__ == "__main__":
    root = jax.random.PRNGKey(0)
    k_x, k_x4, k_mask = jax.random.split(root, 3)

    drop_prob = 0.3
    keep_prob = 1.0 - drop_prob
    module = DropPath(drop_prob=drop_prob)
    module.training = True

    # ViT-style activation: (batch, seq, hidden) = (2, 8, 32) -> F = 256 (lane-dense)
    B, N, D = 2, 8, 32
    x = jax.random.normal(k_x, (B, N, D), dtype=jnp.float32)
    out = jax.block_until_ready(module(x, k_mask))

    rand = keep_prob + jax.random.uniform(k_mask, (B,), dtype=jnp.float32)
    mask = jnp.floor(rand).reshape(B, 1, 1)
    ref = x / keep_prob * mask
    assert out.shape == x.shape and out.dtype == x.dtype
    assert jnp.allclose(out, ref, atol=1e-6, rtol=1e-6), "3D mismatch vs reference"

    # NCHW-style activation: exercises the flatten-trailing-dims path.
    B2, C, H, W = 2, 4, 16, 16
    x4 = jax.random.normal(k_x4, (B2, C, H, W), dtype=jnp.float32)
    out4 = jax.block_until_ready(module(x4, k_mask))
    rand4 = keep_prob + jax.random.uniform(k_mask, (B2,), dtype=jnp.float32)
    mask4 = jnp.floor(rand4).reshape(B2, 1, 1, 1)
    ref4 = x4 / keep_prob * mask4
    assert out4.shape == x4.shape and out4.dtype == x4.dtype
    assert jnp.allclose(out4, ref4, atol=1e-6, rtol=1e-6), "4D mismatch vs reference"

    # Eval mode / drop_prob=0 path: identity.
    module.training = False
    out_eval = jax.block_until_ready(module(x, k_mask))
    assert jnp.array_equal(out_eval, x)

    print("KERNEL_OK")
</pallas_src>

<mosaic_0001>
module attributes {stable_mosaic.version = 11 : i64} {
  func.func @_drop_path_kernel(%arg0: i32, %arg1: i32, %arg2: memref<2x1xf32, #tpu.memory_space<vmem>>, %arg3: memref<2x256xf32, #tpu.memory_space<vmem>>, %arg4: memref<2x256xf32, #tpu.memory_space<vmem>>) attributes {dimension_semantics = [#tpu.dimension_semantics<parallel>, #tpu.dimension_semantics<parallel>], iteration_bounds = array<i64: 1, 1>, scalar_prefetch = 0 : i64, scratch_operands = 0 : i64, tpu.core_type = #tpu.core_type<tc>, window_params = [{transform_indices = @transform_0, window_bounds = array<i64: 2, 1>}, {transform_indices = @transform_1, window_bounds = array<i64: 2, 256>}, {transform_indices = @transform_2, window_bounds = array<i64: 2, 256>}]} {
    %c0 = arith.constant 0 : index
    %c0_0 = arith.constant 0 : index
    %0 = vector.load %arg3[%c0, %c0_0] : memref<2x256xf32, #tpu.memory_space<vmem>>, vector<2x256xf32>
    %c0_1 = arith.constant 0 : index
    %c0_2 = arith.constant 0 : index
    %1 = vector.load %arg2[%c0_1, %c0_2] : memref<2x1xf32, #tpu.memory_space<vmem>>, vector<2x1xf32>
    %2 = vector.broadcast %1 : vector<2x1xf32> to vector<2x256xf32>
    %3 = arith.mulf %0, %2 : vector<2x256xf32>
    %c0_3 = arith.constant 0 : index
    %c0_4 = arith.constant 0 : index
    %4 = vector.load %arg4[%c0_3, %c0_4] : memref<2x256xf32, #tpu.memory_space<vmem>>, vector<2x256xf32>
    tpu.vector_store %arg4[%c0_3, %c0_4], %3 {strides = array<i32>} : memref<2x256xf32, #tpu.memory_space<vmem>>, vector<2x256xf32>,
    return
  }
  func.func @transform_0(%arg0: i32, %arg1: i32) -> (i32, i32) {
    %c0_i32 = arith.constant 0 : i32
    %c0_i32_0 = arith.constant 0 : i32
    return %arg0, %c0_i32 : i32, i32
  }
  func.func @transform_1(%arg0: i32, %arg1: i32) -> (i32, i32) {
    %c0_i32 = arith.constant 0 : i32
    return %arg0, %arg1 : i32, i32
  }
  func.func @transform_2(%arg0: i32, %arg1: i32) -> (i32, i32) {
    %c0_i32 = arith.constant 0 : i32
    return %arg0, %arg1 : i32, i32
  }
}

</mosaic_0001>

<bundles_post_ra>
// kernel: tpu_custom_call.1
= control target key start
LH: loop header
LB: loop body
LE: loop exit
PB: predicated region body
PF: predicated region fallthrough
CT: control target
= control target key end

     0   :  { %7 = vsyncpa [#allocation3], 0  ;;  %s141_s0 = inlined_call_operand.vmem [shape: f32[2,1], index: 0, kind: input, shape index: {}]   ;;  %s142_s1 = inlined_call_operand.hbm [shape: f32[2,256], index: 1, kind: input, shape index: {}]   ;;  %s143_s2 = inlined_call_operand.hbm [shape: f32[2,256], index: 2, kind: output, shape index: {}]  }
   0x1   :  { %8 = vsyncpa [#allocation4], 0  ;;  %s16_s11 = sshll.u32 %s142_s1, 4  ;;  %s113_s12 = smov [#allocation2]   ;;  %s17_s11 = int_to_ptr.hbm [resolvable:$true] %s16_s11 }
   0x2   :  { %s18_s13 = sshll.u32 %s113_s12, 4  ;;  %s19_s13 = int_to_ptr.vmem [resolvable:$true] %s18_s13 }
   0x3   :  { %21 = dma.hbm_to_vmem [thread:$0]  %s17_s11, 64, %s19_s13, [#allocation3]  }
   0x4   :  { %109 = dma.done.wait [#allocation3], 64  }
   0x5   :  { %110 = vsyncadd [#allocation3], 4294967232  ;;  %v114_v0 = vmov 0   ;;  %v27_v1 = vld [vmem:[%s141_s0] sm:$0x3]  ;;  %s116_s1 = smov [#allocation5]  }
   0x6   :  { %60 = vset.pattern.permute.xlu0 %v114_v0  ;;  %v115_v2 = vmov 269488144   ;;  %v26_v6 = vld [vmem:[#allocation2] sm:$0xf]  ;;  %s44_s16 = sshll.u32 %s116_s1, 4  ;;  %s46_s19 = sshll.u32 %s143_s2, 4  ;;  %s45_s16 = int_to_ptr.vmem [resolvable:$true] %s44_s16  ;;  %s47_s19 = int_to_ptr.hbm [resolvable:$true] %s46_s19 }
   0x7   :  { %30 = vperm.xlu0 %60, %v27_v1   ;;  %v33_v3 = vunpack.c.l.s4 %v115_v2 }
   0x9   :  { %v34_v4 = vunpack.c.0.s8 %v33_v3 }
  0x79   :  { %v31_v5 = vpop.permute.xlu0 %30 }
  0x7a   :  { %v35_v7 = vperm.slane %v31_v5, %v34_v4 }
  0x7c   :  { %v37_v8 = vmul.f32 %v35_v7, %v26_v6 }
  0x7e   :  { %38 = vst [vmem:[#allocation5] sm:$0xf] %v37_v8 }
  0x7f   :  { %49 = dma.vmem_to_hbm [thread:$0]  %s45_s16, 64, %s47_s19, [#allocation4]  }
  0x80   :  { %111 = dma.done.wait [#allocation4], 64  }
  0x81   :  { %112 = vsyncadd [#allocation4], 4294967232 }
  0x82   :  { %54 = vsyncpa [#allocation3], 1 }
  0x83   :  { %55 = vsyncpa [#allocation4], 1 }

</bundles_post_ra>
